<compile_context>
chip_gen: v7x
topology: tpu7x:2x2x1
jax: 0.10.0
libtpu: 0.0.40
codegen_flags: <defaults>
</compile_context>

<pallas_src>
import functools

import numpy as np
import jax
import jax.numpy as jnp
from jax import lax
from jax.experimental import pallas as pl
from jax.experimental.pallas import tpu as pltpu

_COMPUTE_DTYPE = jnp.bfloat16   # MXU operand / scratch dtype; accumulation stays f32
_LANE = 128
_SUBLANE = 8


def _round_up(x, m):
    return (x + m - 1) // m * m


def _vmem_budget_bytes():
    cap = 64 * 1024 * 1024                       # conservative default (v7x physical VMEM)
    try:
        info = pltpu.get_tpu_info()
        cap = int(getattr(info, "vmem_capacity_bytes", cap) or cap)
    except Exception:
        pass
    # ~50 MiB budget on v7x (64 MiB VMEM), ~100 MiB on v5e/v6e (128 MiB VMEM).
    return min(int(cap * 0.78), 100 * 1024 * 1024)


def _tile_vmem_bytes(TH, halo, W, cin, cout, cin_p, cmid_p, out_itemsize):
    """Rough per-grid-step VMEM footprint (bytes) and the margin used."""
    s_src = (TH + 4 * halo) * W
    s_mid = (TH + 2 * halo) * W
    s_out = TH * W
    margin = _LANE if halo else _LANE * pl.cdiv(W + 1, _LANE)
    x_item = 2 if halo else 4                    # tiled path ships bf16, whole-image ships f32
    blocks = 2 * (cin * s_src * x_item + cout * s_out * out_itemsize)   # double-buffered I/O
    weights = 2 * ((cmid_p * 9 * cin_p + cout * 9 * cmid_p) * 2 + (cmid_p + cout) * 4)
    scratch = (cin_p * (s_src + 2 * margin) + 9 * cin_p * s_mid
               + cmid_p * (s_mid + 2 * margin) + 9 * cmid_p * s_out) * 2
    live = (cmid_p * s_mid + cout * s_out) * 4                          # f32 intermediates
    return blocks + weights + scratch + live, margin


def _plan_row_tile(H, W, cin, cout, cin_p, cmid_p, out_itemsize, row_tile, budget):
    """Pick (TH, halo, margin): whole image if it fits, else lane-dense row tiles."""
    def fits(TH, halo):
        est, margin = _tile_vmem_bytes(TH, halo, W, cin, cout, cin_p, cmid_p, out_itemsize)
        return int(est * 1.25) <= budget, margin

    if row_tile is not None:
        if H % row_tile != 0:
            raise ValueError("row_tile must divide H")
        halo = 0 if row_tile == H else 1
        if halo and (row_tile * W) % _LANE != 0:
            raise ValueError("row_tile * W must be a multiple of 128 lanes")
        _, margin = fits(row_tile, halo)
        return row_tile, halo, margin

    ok, margin = fits(H, 0)
    if ok:
        return H, 0, margin
    # Whole image does not fit: row-tile with a halo; keep output tiles lane-dense.
    cands = [d for d in range(H - 1, 0, -1) if H % d == 0 and (d * W) % _LANE == 0]
    if not cands:
        cands = [H]
    for TH in cands:
        ok, margin = fits(TH, 1)
        if ok:
            return TH, 1, margin
    TH = cands[-1]
    _, margin = fits(TH, 1)
    return TH, 1, margin


def _double_conv_kernel(x_ref, w1_ref, b1_ref, w2_ref, b2_ref, o_ref,
                        xbuf1, patches1, xbuf2, patches2,
                        *, W, TH, margin, halo):
    # Per grid step (image n, row-tile t):
    #   x_ref   : (1, 1, Cin, S_src)     flat channel-major input slab
    #   w*_ref  : (C_out_pad, 9*C_in_pad) bf16, BN scale pre-folded
    #   b*_ref  : (C_out_pad, 1)          f32 folded BN bias
    #   o_ref   : (1, Cout, S_out)        lane-dense output tile
    #   xbuf*   : bf16 margin buffers, patches*: bf16 im2col matrices
    S_out = TH * W                   # conv2 output rows per step
    S_mid = (TH + 2 * halo) * W      # conv1 output slab == conv2 source slab
    S_src = (TH + 4 * halo) * W      # conv1 source slab == x block spatial size

    t = pl.program_id(1)
    cin = x_ref.shape[2]
    cin_p = xbuf1.shape[0]
    cmid_p = xbuf2.shape[0]

    # Horizontal (left/right image edge) masks, hoisted out of the tap loop.
    # Vertical edges are covered by zero halo rows / zeroed margins -> no row masks.
    def edge_masks(S_o):
        ww = lax.broadcasted_iota(jnp.int32, (1, S_o), 1) % W
        return ww >= 1, ww <= W - 2

    keep_l_mid, keep_r_mid = edge_masks(S_mid)
    keep_l_out, keep_r_out = edge_masks(S_out)

    def build_patches(src_buf, patches, C, S_o, keep_l, keep_r):
        # src_buf[:, margin : margin + S_o + 2*halo*W] holds the source slab;
        # tap (dh, dw) for output position m reads slab pos m + (dh-1+halo)*W + (dw-1).
        for dh in range(3):
            for dw in range(3):
                off = (dh - 1 + halo) * W + (dw - 1)
                win = src_buf[:, margin + off:margin + off + S_o]
                if dw == 0:
                    win = jnp.where(keep_l, win, jnp.zeros_like(win))
                elif dw == 2:
                    win = jnp.where(keep_r, win, jnp.zeros_like(win))
                tap = dh * 3 + dw
                patches[tap * C:(tap + 1) * C, :] = win

    # ------------- conv1 (BN1 scale folded into w1) + bias + ReLU -------------
    if cin < cin_p:                                   # zero the padded channel rows
        xbuf1[cin:, :] = jnp.zeros((cin_p - cin, xbuf1.shape[1]), xbuf1.dtype)
    xbuf1[:cin, :margin] = jnp.zeros((cin, margin), xbuf1.dtype)
    xbuf1[:cin, margin + S_src:] = jnp.zeros((cin, margin), xbuf1.dtype)
    xbuf1[:cin, margin:margin + S_src] = x_ref[0, 0].astype(xbuf1.dtype)  # bf16 cast here
    build_patches(xbuf1, patches1, cin_p, S_mid, keep_l_mid, keep_r_mid)
    acc1 = jnp.dot(w1_ref[...], patches1[...], preferred_element_type=jnp.float32)
    mid = jnp.maximum(acc1 + b1_ref[...], 0.0)         # (Cmid_pad, S_mid) f32 epilogue

    # ------------- conv2 (BN2 scale folded into w2) + bias + ReLU -------------
    xbuf2[:, :margin] = jnp.zeros((cmid_p, margin), xbuf2.dtype)
    xbuf2[:, margin + S_mid:] = jnp.zeros((cmid_p, margin), xbuf2.dtype)
    xbuf2[:, margin:margin + S_mid] = mid.astype(xbuf2.dtype)

    if halo:
        # The slab's first/last rows are "virtual" mid rows outside the image
        # for the top/bottom row tiles; conv2's zero padding needs them zeroed.
        @pl.when(t == 0)
        def _():
            xbuf2[:, margin:margin + W] = jnp.zeros((cmid_p, W), xbuf2.dtype)

        @pl.when(t == pl.num_programs(1) - 1)
        def _():
            xbuf2[:, margin + (TH + 1) * W:margin + S_mid] = jnp.zeros(
                (cmid_p, W), xbuf2.dtype)

    build_patches(xbuf2, patches2, cmid_p, S_out, keep_l_out, keep_r_out)
    acc2 = jnp.dot(w2_ref[...], patches2[...], preferred_element_type=jnp.float32)
    out = jnp.maximum(acc2 + b2_ref[...], 0.0)          # (Cout, S_out) f32
    o_ref[0] = out.astype(o_ref.dtype)                  # lane-dense bf16 store


@functools.partial(jax.jit, static_argnames=("row_tile", "out_dtype"))
def double_conv(x_nchw, w1, s1, b1, w2, s2, b2, *, row_tile=None,
                out_dtype=jnp.bfloat16):
    """Fused Conv3x3 -> BN -> ReLU -> Conv3x3 -> BN -> ReLU (inference-form BN).

    x_nchw: (N, Cin, H, W); w1: (Cmid, Cin, 3, 3); w2: (Cout, Cmid, 3, 3).
    s*/b* are folded BatchNorm scale/bias:
      scale = gamma / sqrt(running_var + eps), bias = beta - running_mean * scale
    row_tile: output rows per grid step (None = auto from the VMEM budget).
    """
    N, Cin, H, W = x_nchw.shape
    Cmid, Cout = w1.shape[0], w2.shape[0]
    cin_p = _round_up(Cin, _SUBLANE)
    cmid_p = _round_up(Cmid, _SUBLANE)
    out_itemsize = np.dtype(out_dtype).itemsize

    budget = _vmem_budget_bytes()
    TH, halo, margin = _plan_row_tile(H, W, Cin, Cout, cin_p, cmid_p,
                                      out_itemsize, row_tile, budget)
    T = H // TH
    s_src = (TH + 4 * halo) * W
    s_mid = (TH + 2 * halo) * W
    s_out = TH * W

    if halo:
        # Single fused wrapper pass: 2-row vertical zero pad + overlapping
        # row-tile halo windows + bf16 cast.
        xp = jnp.pad(x_nchw, ((0, 0), (0, 0), (2, 2), (0, 0))).astype(_COMPUTE_DTYPE)
        x_in = jnp.stack([xp[:, :, t * TH:t * TH + TH + 4, :] for t in range(T)],
                         axis=1).reshape(N, T, Cin, s_src)
    else:
        # Whole image per grid step: free reshape only, f32 straight into the
        # kernel (bf16 cast happens on the in-kernel im2col store).
        x_in = x_nchw.reshape(N, 1, Cin, s_src)

    # OIHW -> (O_pad, 9*I_pad), column order (dh*3+dw)*I_pad + i, BN scale folded.
    w1p = jnp.pad(w1, ((0, cmid_p - Cmid), (0, cin_p - Cin), (0, 0), (0, 0)))
    s1p = jnp.pad(s1, (0, cmid_p - Cmid))
    b1p = jnp.pad(b1, (0, cmid_p - Cmid))
    w1_k = (jnp.transpose(w1p, (0, 2, 3, 1)).reshape(cmid_p, 9 * cin_p)
            * s1p[:, None]).astype(_COMPUTE_DTYPE)
    b1_k = b1p.reshape(cmid_p, 1).astype(jnp.float32)

    w2p = jnp.pad(w2, ((0, 0), (0, cmid_p - Cmid), (0, 0), (0, 0)))
    w2_k = (jnp.transpose(w2p, (0, 2, 3, 1)).reshape(Cout, 9 * cmid_p)
            * s2[:, None]).astype(_COMPUTE_DTYPE)
    b2_k = b2.reshape(Cout, 1).astype(jnp.float32)

    kernel = functools.partial(_double_conv_kernel, W=W, TH=TH, margin=margin,
                               halo=halo)
    out_flat = pl.pallas_call(
        kernel,
        out_shape=jax.ShapeDtypeStruct((N, Cout, H * W), out_dtype),
        grid_spec=pltpu.PrefetchScalarGridSpec(
            num_scalar_prefetch=0,
            grid=(N, T),
            in_specs=[
                pl.BlockSpec((1, 1, Cin, s_src), lambda n, t: (n, t, 0, 0)),
                pl.BlockSpec((cmid_p, 9 * cin_p), lambda n, t: (0, 0)),
                pl.BlockSpec((cmid_p, 1), lambda n, t: (0, 0)),
                pl.BlockSpec((Cout, 9 * cmid_p), lambda n, t: (0, 0)),
                pl.BlockSpec((Cout, 1), lambda n, t: (0, 0)),
            ],
            out_specs=pl.BlockSpec((1, Cout, s_out), lambda n, t: (n, 0, t)),
            scratch_shapes=[
                pltpu.VMEM((cin_p, s_src + 2 * margin), _COMPUTE_DTYPE),
                pltpu.VMEM((9 * cin_p, s_mid), _COMPUTE_DTYPE),
                pltpu.VMEM((cmid_p, s_mid + 2 * margin), _COMPUTE_DTYPE),
                pltpu.VMEM((9 * cmid_p, s_out), _COMPUTE_DTYPE),
            ],
        ),
        compiler_params=pltpu.CompilerParams(
            dimension_semantics=("parallel", "parallel"),
            vmem_limit_bytes=budget,
        ),
    )(x_in, w1_k, b1_k, w2_k, b2_k)

    # Free reshape back to NCHW.
    return out_flat.reshape(N, Cout, H, W)


def _reference(x, w1, s1, b1, w2, s2, b2):
    """Pure-JAX NCHW reference emulating the kernel's bf16 operand rounding."""
    def fold(w, s):
        O, I = w.shape[0], w.shape[1]
        wf = jnp.transpose(w, (0, 2, 3, 1)).reshape(O, 9 * I) * s[:, None]
        wf = wf.astype(_COMPUTE_DTYPE).astype(jnp.float32)
        return jnp.transpose(wf.reshape(O, 3, 3, I), (0, 3, 1, 2))   # back to OIHW

    def conv(a, w):
        dn = lax.conv_dimension_numbers(a.shape, w.shape, ("NCHW", "OIHW", "NCHW"))
        return lax.conv_general_dilated(a, w, (1, 1), ((1, 1), (1, 1)),
                                        dimension_numbers=dn)

    xr = x.astype(_COMPUTE_DTYPE).astype(jnp.float32)
    y = jnp.maximum(conv(xr, fold(w1, s1)) + b1[None, :, None, None], 0.0)
    yr = y.astype(_COMPUTE_DTYPE).astype(jnp.float32)
    z = jnp.maximum(conv(yr, fold(w2, s2)) + b2[None, :, None, None], 0.0)
    return z


if __name__ == "__main__":
    N, Cin, H, W = 2, 4, 16, 16
    Cmid, Cout = 8, 8
    eps = 1e-5

    key = jax.random.PRNGKey(0)
    kx, k1, k2 = jax.random.split(key, 3)

    x = jax.random.normal(kx, (N, Cin, H, W), jnp.float32)
    # Conv2d(bias=False) weights, kaiming-ish scale.
    w1 = jax.random.normal(k1, (Cmid, Cin, 3, 3), jnp.float32) * (2.0 / (Cin * 9)) ** 0.5
    w2 = jax.random.normal(k2, (Cout, Cmid, 3, 3), jnp.float32) * (2.0 / (Cmid * 9)) ** 0.5

    # BatchNorm parameters at PyTorch defaults, folded to scale/bias.
    gamma1 = jnp.ones((Cmid,)); beta1 = jnp.zeros((Cmid,))
    mean1 = jnp.zeros((Cmid,)); var1 = jnp.ones((Cmid,))
    s1 = gamma1 / jnp.sqrt(var1 + eps); b1 = beta1 - mean1 * s1

    gamma2 = jnp.ones((Cout,)); beta2 = jnp.zeros((Cout,))
    mean2 = jnp.zeros((Cout,)); var2 = jnp.ones((Cout,))
    s2 = gamma2 / jnp.sqrt(var2 + eps); b2 = beta2 - mean2 * s2

    ref = _reference(x, w1, s1, b1, w2, s2, b2)

    # Auto plan: whole image per grid step at this size (no wrapper pass, f32 in).
    out = jax.block_until_ready(double_conv(x, w1, s1, b1, w2, s2, b2))
    assert out.shape == (N, Cout, H, W)
    assert jnp.allclose(out.astype(jnp.float32), ref, atol=2e-2, rtol=2e-2), \
        "mismatch vs reference (whole-image path)"

    # Forced spatial row tiling: exercises the halo / boundary-row handling.
    out_t = jax.block_until_ready(double_conv(x, w1, s1, b1, w2, s2, b2, row_tile=8))
    assert jnp.allclose(out_t.astype(jnp.float32), ref, atol=2e-2, rtol=2e-2), \
        "mismatch vs reference (row-tiled path)"

    print("KERNEL_OK")
</pallas_src>

<mosaic_0001>
module attributes {stable_mosaic.version = 11 : i64} {
  func.func @_double_conv_kernel(%arg0: i32, %arg1: i32, %arg2: memref<1x1x4x256xf32, #tpu.memory_space<vmem>>, %arg3: memref<8x72xbf16, #tpu.memory_space<vmem>>, %arg4: memref<8x1xf32, #tpu.memory_space<vmem>>, %arg5: memref<8x72xbf16, #tpu.memory_space<vmem>>, %arg6: memref<8x1xf32, #tpu.memory_space<vmem>>, %arg7: memref<1x8x256xbf16, #tpu.memory_space<vmem>>, %arg8: memref<8x512xbf16, #tpu.memory_space<vmem>>, %arg9: memref<72x256xbf16, #tpu.memory_space<vmem>>, %arg10: memref<8x512xbf16, #tpu.memory_space<vmem>>, %arg11: memref<72x256xbf16, #tpu.memory_space<vmem>>) attributes {dimension_semantics = [#tpu.dimension_semantics<parallel>, #tpu.dimension_semantics<parallel>], iteration_bounds = array<i64: 2, 1>, scalar_prefetch = 0 : i64, scratch_operands = 4 : i64, tpu.core_type = #tpu.core_type<tc>, window_params = [{transform_indices = @transform_0, window_bounds = array<i64: 1, 1, 4, 256>}, {pipeline_mode = #tpu.pipeline_mode<synchronous>, transform_indices = @transform_1, window_bounds = array<i64: 8, 72>}, {pipeline_mode = #tpu.pipeline_mode<synchronous>, transform_indices = @transform_2, window_bounds = array<i64: 8, 1>}, {pipeline_mode = #tpu.pipeline_mode<synchronous>, transform_indices = @transform_3, window_bounds = array<i64: 8, 72>}, {pipeline_mode = #tpu.pipeline_mode<synchronous>, transform_indices = @transform_4, window_bounds = array<i64: 8, 1>}, {transform_indices = @transform_5, window_bounds = array<i64: 1, 8, 256>}]} {
    %0 = tpu.iota {dimensions = array<i32: 1>} : vector<1x256xi32>
    %c16_i32 = arith.constant 16 : i32
    %c0_i32 = arith.constant 0 : i32
    %1 = arith.cmpi eq, %c16_i32, %c0_i32 : i32
    %c1_i32 = arith.constant 1 : i32
    %2 = arith.select %1, %c1_i32, %c16_i32 : i32
    %3 = vector.broadcast %2 : i32 to vector<1x256xi32>
    %4 = arith.remsi %0, %3 : vector<1x256xi32>
    %c0_i32_0 = arith.constant 0 : i32
    %5 = vector.broadcast %c0_i32_0 : i32 to vector<1x256xi32>
    %6 = arith.cmpi ne, %4, %5 : vector<1x256xi32>
    %c0_i32_1 = arith.constant 0 : i32
    %7 = vector.broadcast %c0_i32_1 : i32 to vector<1x256xi32>
    %8 = arith.cmpi slt, %4, %7 : vector<1x256xi32>
    %c0_i32_2 = arith.constant 0 : i32
    %9 = arith.cmpi slt, %2, %c0_i32_2 : i32
    %10 = vector.broadcast %9 : i1 to vector<1x256xi1>
    %11 = vector.broadcast %10 : vector<1x256xi1> to vector<1x256xi1>
    %12 = arith.xori %8, %11 : vector<1x256xi1>
    %13 = arith.andi %12, %6 : vector<1x256xi1>
    %14 = vector.broadcast %2 : i32 to vector<1x256xi32>
    %15 = arith.addi %4, %14 : vector<1x256xi32>
    %16 = arith.select %13, %15, %4 : vector<1x256xi1>, vector<1x256xi32>
    %c1_i32_3 = arith.constant 1 : i32
    %17 = vector.broadcast %c1_i32_3 : i32 to vector<1x256xi32>
    %18 = arith.cmpi sge, %16, %17 : vector<1x256xi32>
    %c14_i32 = arith.constant 14 : i32
    %19 = vector.broadcast %c14_i32 : i32 to vector<1x256xi32>
    %20 = arith.cmpi sle, %16, %19 : vector<1x256xi32>
    %21 = tpu.iota {dimensions = array<i32: 1>} : vector<1x256xi32>
    %c16_i32_4 = arith.constant 16 : i32
    %c0_i32_5 = arith.constant 0 : i32
    %22 = arith.cmpi eq, %c16_i32_4, %c0_i32_5 : i32
    %c1_i32_6 = arith.constant 1 : i32
    %23 = arith.select %22, %c1_i32_6, %c16_i32_4 : i32
    %24 = vector.broadcast %23 : i32 to vector<1x256xi32>
    %25 = arith.remsi %21, %24 : vector<1x256xi32>
    %c0_i32_7 = arith.constant 0 : i32
    %26 = vector.broadcast %c0_i32_7 : i32 to vector<1x256xi32>
    %27 = arith.cmpi ne, %25, %26 : vector<1x256xi32>
    %c0_i32_8 = arith.constant 0 : i32
    %28 = vector.broadcast %c0_i32_8 : i32 to vector<1x256xi32>
    %29 = arith.cmpi slt, %25, %28 : vector<1x256xi32>
    %c0_i32_9 = arith.constant 0 : i32
    %30 = arith.cmpi slt, %23, %c0_i32_9 : i32
    %31 = vector.broadcast %30 : i1 to vector<1x256xi1>
    %32 = vector.broadcast %31 : vector<1x256xi1> to vector<1x256xi1>
    %33 = arith.xori %29, %32 : vector<1x256xi1>
    %34 = arith.andi %33, %27 : vector<1x256xi1>
    %35 = vector.broadcast %23 : i32 to vector<1x256xi32>
    %36 = arith.addi %25, %35 : vector<1x256xi32>
    %37 = arith.select %34, %36, %25 : vector<1x256xi1>, vector<1x256xi32>
    %c1_i32_10 = arith.constant 1 : i32
    %38 = vector.broadcast %c1_i32_10 : i32 to vector<1x256xi32>
    %39 = arith.cmpi sge, %37, %38 : vector<1x256xi32>
    %c14_i32_11 = arith.constant 14 : i32
    %40 = vector.broadcast %c14_i32_11 : i32 to vector<1x256xi32>
    %41 = arith.cmpi sle, %37, %40 : vector<1x256xi32>
    %cst = arith.constant 0.000000e+00 : bf16
    %42 = vector.broadcast %cst : bf16 to vector<4x512xbf16>
    %c4 = arith.constant 4 : index
    %c0 = arith.constant 0 : index
    %43 = vector.load %arg8[%c4, %c0] : memref<8x512xbf16, #tpu.memory_space<vmem>>, vector<4x512xbf16>
    tpu.vector_store %arg8[%c4, %c0], %42 {strides = array<i32>} : memref<8x512xbf16, #tpu.memory_space<vmem>>, vector<4x512xbf16>,
    %cst_12 = arith.constant 0.000000e+00 : bf16
    %44 = vector.broadcast %cst_12 : bf16 to vector<4x128xbf16>
    %c0_13 = arith.constant 0 : index
    %c0_14 = arith.constant 0 : index
    %45 = vector.load %arg8[%c0_13, %c0_14] : memref<8x512xbf16, #tpu.memory_space<vmem>>, vector<4x128xbf16>
    tpu.vector_store %arg8[%c0_13, %c0_14], %44 {strides = array<i32>} : memref<8x512xbf16, #tpu.memory_space<vmem>>, vector<4x128xbf16>,
    %cst_15 = arith.constant 0.000000e+00 : bf16
    %46 = vector.broadcast %cst_15 : bf16 to vector<4x128xbf16>
    %c0_16 = arith.constant 0 : index
    %c384 = arith.constant 384 : index
    %47 = vector.load %arg8[%c0_16, %c384] : memref<8x512xbf16, #tpu.memory_space<vmem>>, vector<4x128xbf16>
    tpu.vector_store %arg8[%c0_16, %c384], %46 {strides = array<i32>} : memref<8x512xbf16, #tpu.memory_space<vmem>>, vector<4x128xbf16>,
    %c0_17 = arith.constant 0 : index
    %c0_18 = arith.constant 0 : index
    %c0_19 = arith.constant 0 : index
    %c0_20 = arith.constant 0 : index
    %48 = vector.load %arg2[%c0_17, %c0_18, %c0_19, %c0_20] : memref<1x1x4x256xf32, #tpu.memory_space<vmem>>, vector<1x1x4x256xf32>
    %49 = vector.shape_cast %48 : vector<1x1x4x256xf32> to vector<4x256xf32>
    %50 = arith.truncf %49 : vector<4x256xf32> to vector<4x256xbf16>
    %c0_21 = arith.constant 0 : index
    %c128 = arith.constant 128 : index
    %51 = vector.load %arg8[%c0_21, %c128] : memref<8x512xbf16, #tpu.memory_space<vmem>>, vector<4x256xbf16>
    tpu.vector_store %arg8[%c0_21, %c128], %50 {strides = array<i32>} : memref<8x512xbf16, #tpu.memory_space<vmem>>, vector<4x256xbf16>,
    %c0_22 = arith.constant 0 : index
    %c111 = arith.constant 111 : index
    %52 = vector.load %arg8[%c0_22, %c111] : memref<8x512xbf16, #tpu.memory_space<vmem>>, vector<8x256xbf16>
    %cst_23 = arith.constant 0.000000e+00 : bf16
    %53 = vector.broadcast %cst_23 : bf16 to vector<8x256xbf16>
    %54 = vector.shape_cast %18 : vector<1x256xi1> to vector<1x256xi1>
    %55 = vector.broadcast %54 : vector<1x256xi1> to vector<8x256xi1>
    %56 = arith.select %55, %52, %53 : vector<8x256xi1>, vector<8x256xbf16>
    %c0_24 = arith.constant 0 : index
    %c0_25 = arith.constant 0 : index
    %57 = vector.load %arg9[%c0_24, %c0_25] : memref<72x256xbf16, #tpu.memory_space<vmem>>, vector<8x256xbf16>
    tpu.vector_store %arg9[%c0_24, %c0_25], %56 {strides = array<i32>} : memref<72x256xbf16, #tpu.memory_space<vmem>>, vector<8x256xbf16>,
    %c0_26 = arith.constant 0 : index
    %c112 = arith.constant 112 : index
    %58 = vector.load %arg8[%c0_26, %c112] : memref<8x512xbf16, #tpu.memory_space<vmem>>, vector<8x256xbf16>
    %c8 = arith.constant 8 : index
    %c0_27 = arith.constant 0 : index
    %59 = vector.load %arg9[%c8, %c0_27] : memref<72x256xbf16, #tpu.memory_space<vmem>>, vector<8x256xbf16>
    tpu.vector_store %arg9[%c8, %c0_27], %58 {strides = array<i32>} : memref<72x256xbf16, #tpu.memory_space<vmem>>, vector<8x256xbf16>,
    %c0_28 = arith.constant 0 : index
    %c113 = arith.constant 113 : index
    %60 = vector.load %arg8[%c0_28, %c113] : memref<8x512xbf16, #tpu.memory_space<vmem>>, vector<8x256xbf16>
    %cst_29 = arith.constant 0.000000e+00 : bf16
    %61 = vector.broadcast %cst_29 : bf16 to vector<8x256xbf16>
    %62 = vector.shape_cast %20 : vector<1x256xi1> to vector<1x256xi1>
    %63 = vector.broadcast %62 : vector<1x256xi1> to vector<8x256xi1>
    %64 = arith.select %63, %60, %61 : vector<8x256xi1>, vector<8x256xbf16>
    %c16 = arith.constant 16 : index
    %c0_30 = arith.constant 0 : index
    %65 = vector.load %arg9[%c16, %c0_30] : memref<72x256xbf16, #tpu.memory_space<vmem>>, vector<8x256xbf16>
    tpu.vector_store %arg9[%c16, %c0_30], %64 {strides = array<i32>} : memref<72x256xbf16, #tpu.memory_space<vmem>>, vector<8x256xbf16>,
    %c0_31 = arith.constant 0 : index
    %c127 = arith.constant 127 : index
    %66 = vector.load %arg8[%c0_31, %c127] : memref<8x512xbf16, #tpu.memory_space<vmem>>, vector<8x256xbf16>
    %cst_32 = arith.constant 0.000000e+00 : bf16
    %67 = vector.broadcast %cst_32 : bf16 to vector<8x256xbf16>
    %68 = vector.shape_cast %18 : vector<1x256xi1> to vector<1x256xi1>
    %69 = vector.broadcast %68 : vector<1x256xi1> to vector<8x256xi1>
    %70 = arith.select %69, %66, %67 : vector<8x256xi1>, vector<8x256xbf16>
    %c24 = arith.constant 24 : index
    %c0_33 = arith.constant 0 : index
    %71 = vector.load %arg9[%c24, %c0_33] : memref<72x256xbf16, #tpu.memory_space<vmem>>, vector<8x256xbf16>
    tpu.vector_store %arg9[%c24, %c0_33], %70 {strides = array<i32>} : memref<72x256xbf16, #tpu.memory_space<vmem>>, vector<8x256xbf16>,
    %c0_34 = arith.constant 0 : index
    %c128_35 = arith.constant 128 : index
    %72 = vector.load %arg8[%c0_34, %c128_35] : memref<8x512xbf16, #tpu.memory_space<vmem>>, vector<8x256xbf16>
    %c32 = arith.constant 32 : index
    %c0_36 = arith.constant 0 : index
    %73 = vector.load %arg9[%c32, %c0_36] : memref<72x256xbf16, #tpu.memory_space<vmem>>, vector<8x256xbf16>
    tpu.vector_store %arg9[%c32, %c0_36], %72 {strides = array<i32>} : memref<72x256xbf16, #tpu.memory_space<vmem>>, vector<8x256xbf16>,
    %c0_37 = arith.constant 0 : index
    %c129 = arith.constant 129 : index
    %74 = vector.load %arg8[%c0_37, %c129] : memref<8x512xbf16, #tpu.memory_space<vmem>>, vector<8x256xbf16>
    %cst_38 = arith.constant 0.000000e+00 : bf16
    %75 = vector.broadcast %cst_38 : bf16 to vector<8x256xbf16>
    %76 = vector.shape_cast %20 : vector<1x256xi1> to vector<1x256xi1>
    %77 = vector.broadcast %76 : vector<1x256xi1> to vector<8x256xi1>
    %78 = arith.select %77, %74, %75 : vector<8x256xi1>, vector<8x256xbf16>
    %c40 = arith.constant 40 : index
    %c0_39 = arith.constant 0 : index
    %79 = vector.load %arg9[%c40, %c0_39] : memref<72x256xbf16, #tpu.memory_space<vmem>>, vector<8x256xbf16>
    tpu.vector_store %arg9[%c40, %c0_39], %78 {strides = array<i32>} : memref<72x256xbf16, #tpu.memory_space<vmem>>, vector<8x256xbf16>,
    %c0_40 = arith.constant 0 : index
    %c143 = arith.constant 143 : index
    %80 = vector.load %arg8[%c0_40, %c143] : memref<8x512xbf16, #tpu.memory_space<vmem>>, vector<8x256xbf16>
    %cst_41 = arith.constant 0.000000e+00 : bf16
    %81 = vector.broadcast %cst_41 : bf16 to vector<8x256xbf16>
    %82 = vector.shape_cast %18 : vector<1x256xi1> to vector<1x256xi1>
    %83 = vector.broadcast %82 : vector<1x256xi1> to vector<8x256xi1>
    %84 = arith.select %83, %80, %81 : vector<8x256xi1>, vector<8x256xbf16>
    %c48 = arith.constant 48 : index
    %c0_42 = arith.constant 0 : index
    %85 = vector.load %arg9[%c48, %c0_42] : memref<72x256xbf16, #tpu.memory_space<vmem>>, vector<8x256xbf16>
    tpu.vector_store %arg9[%c48, %c0_42], %84 {strides = array<i32>} : memref<72x256xbf16, #tpu.memory_space<vmem>>, vector<8x256xbf16>,
    %c0_43 = arith.constant 0 : index
    %c144 = arith.constant 144 : index
    %86 = vector.load %arg8[%c0_43, %c144] : memref<8x512xbf16, #tpu.memory_space<vmem>>, vector<8x256xbf16>
    %c56 = arith.constant 56 : index
    %c0_44 = arith.constant 0 : index
    %87 = vector.load %arg9[%c56, %c0_44] : memref<72x256xbf16, #tpu.memory_space<vmem>>, vector<8x256xbf16>
    tpu.vector_store %arg9[%c56, %c0_44], %86 {strides = array<i32>} : memref<72x256xbf16, #tpu.memory_space<vmem>>, vector<8x256xbf16>,
    %c0_45 = arith.constant 0 : index
    %c145 = arith.constant 145 : index
    %88 = vector.load %arg8[%c0_45, %c145] : memref<8x512xbf16, #tpu.memory_space<vmem>>, vector<8x256xbf16>
    %cst_46 = arith.constant 0.000000e+00 : bf16
    %89 = vector.broadcast %cst_46 : bf16 to vector<8x256xbf16>
    %90 = vector.shape_cast %20 : vector<1x256xi1> to vector<1x256xi1>
    %91 = vector.broadcast %90 : vector<1x256xi1> to vector<8x256xi1>
    %92 = arith.select %91, %88, %89 : vector<8x256xi1>, vector<8x256xbf16>
    %c64 = arith.constant 64 : index
    %c0_47 = arith.constant 0 : index
    %93 = vector.load %arg9[%c64, %c0_47] : memref<72x256xbf16, #tpu.memory_space<vmem>>, vector<8x256xbf16>
    tpu.vector_store %arg9[%c64, %c0_47], %92 {strides = array<i32>} : memref<72x256xbf16, #tpu.memory_space<vmem>>, vector<8x256xbf16>,
    %c0_48 = arith.constant 0 : index
    %c0_49 = arith.constant 0 : index
    %94 = vector.load %arg3[%c0_48, %c0_49] : memref<8x72xbf16, #tpu.memory_space<vmem>>, vector<8x72xbf16>
    %c0_50 = arith.constant 0 : index
    %c0_51 = arith.constant 0 : index
    %95 = vector.load %arg9[%c0_50, %c0_51] : memref<72x256xbf16, #tpu.memory_space<vmem>>, vector<72x256xbf16>
    %cst_52 = arith.constant dense<0.000000e+00> : vector<8x256xf32>
    %96 = tpu.matmul %94, %95, %cst_52 {dimension_numbers = #tpu.dot_dimension_numbers<[1], [0], [0], [1], [0, 0, 1, 1], [], []>} : vector<8x72xbf16>, vector<72x256xbf16>, vector<8x256xf32> -> vector<8x256xf32>
    %c0_53 = arith.constant 0 : index
    %c0_54 = arith.constant 0 : index
    %97 = vector.load %arg4[%c0_53, %c0_54] : memref<8x1xf32, #tpu.memory_space<vmem>>, vector<8x1xf32>
    %98 = vector.broadcast %97 : vector<8x1xf32> to vector<8x256xf32>
    %99 = arith.addf %96, %98 : vector<8x256xf32>
    %cst_55 = arith.constant 0.000000e+00 : f32
    %100 = vector.broadcast %cst_55 : f32 to vector<8x256xf32>
    %101 = arith.maximumf %99, %100 : vector<8x256xf32>
    %cst_56 = arith.constant 0.000000e+00 : bf16
    %102 = vector.broadcast %cst_56 : bf16 to vector<8x128xbf16>
    %c0_57 = arith.constant 0 : index
    %c0_58 = arith.constant 0 : index
    %103 = vector.load %arg10[%c0_57, %c0_58] : memref<8x512xbf16, #tpu.memory_space<vmem>>, vector<8x128xbf16>
    tpu.vector_store %arg10[%c0_57, %c0_58], %102 {strides = array<i32>} : memref<8x512xbf16, #tpu.memory_space<vmem>>, vector<8x128xbf16>,
    %cst_59 = arith.constant 0.000000e+00 : bf16
    %104 = vector.broadcast %cst_59 : bf16 to vector<8x128xbf16>
    %c0_60 = arith.constant 0 : index
    %c384_61 = arith.constant 384 : index
    %105 = vector.load %arg10[%c0_60, %c384_61] : memref<8x512xbf16, #tpu.memory_space<vmem>>, vector<8x128xbf16>
    tpu.vector_store %arg10[%c0_60, %c384_61], %104 {strides = array<i32>} : memref<8x512xbf16, #tpu.memory_space<vmem>>, vector<8x128xbf16>,
    %106 = arith.truncf %101 : vector<8x256xf32> to vector<8x256xbf16>
    %c0_62 = arith.constant 0 : index
    %c128_63 = arith.constant 128 : index
    %107 = vector.load %arg10[%c0_62, %c128_63] : memref<8x512xbf16, #tpu.memory_space<vmem>>, vector<8x256xbf16>
    tpu.vector_store %arg10[%c0_62, %c128_63], %106 {strides = array<i32>} : memref<8x512xbf16, #tpu.memory_space<vmem>>, vector<8x256xbf16>,
    %c0_64 = arith.constant 0 : index
    %c111_65 = arith.constant 111 : index
    %108 = vector.load %arg10[%c0_64, %c111_65] : memref<8x512xbf16, #tpu.memory_space<vmem>>, vector<8x256xbf16>
    %cst_66 = arith.constant 0.000000e+00 : bf16
    %109 = vector.broadcast %cst_66 : bf16 to vector<8x256xbf16>
    %110 = vector.shape_cast %39 : vector<1x256xi1> to vector<1x256xi1>
    %111 = vector.broadcast %110 : vector<1x256xi1> to vector<8x256xi1>
    %112 = arith.select %111, %108, %109 : vector<8x256xi1>, vector<8x256xbf16>
    %c0_67 = arith.constant 0 : index
    %c0_68 = arith.constant 0 : index
    %113 = vector.load %arg11[%c0_67, %c0_68] : memref<72x256xbf16, #tpu.memory_space<vmem>>, vector<8x256xbf16>
    tpu.vector_store %arg11[%c0_67, %c0_68], %112 {strides = array<i32>} : memref<72x256xbf16, #tpu.memory_space<vmem>>, vector<8x256xbf16>,
    %c0_69 = arith.constant 0 : index
    %c112_70 = arith.constant 112 : index
    %114 = vector.load %arg10[%c0_69, %c112_70] : memref<8x512xbf16, #tpu.memory_space<vmem>>, vector<8x256xbf16>
    %c8_71 = arith.constant 8 : index
    %c0_72 = arith.constant 0 : index
    %115 = vector.load %arg11[%c8_71, %c0_72] : memref<72x256xbf16, #tpu.memory_space<vmem>>, vector<8x256xbf16>
    tpu.vector_store %arg11[%c8_71, %c0_72], %114 {strides = array<i32>} : memref<72x256xbf16, #tpu.memory_space<vmem>>, vector<8x256xbf16>,
    %c0_73 = arith.constant 0 : index
    %c113_74 = arith.constant 113 : index
    %116 = vector.load %arg10[%c0_73, %c113_74] : memref<8x512xbf16, #tpu.memory_space<vmem>>, vector<8x256xbf16>
    %cst_75 = arith.constant 0.000000e+00 : bf16
    %117 = vector.broadcast %cst_75 : bf16 to vector<8x256xbf16>
    %118 = vector.shape_cast %41 : vector<1x256xi1> to vector<1x256xi1>
    %119 = vector.broadcast %118 : vector<1x256xi1> to vector<8x256xi1>
    %120 = arith.select %119, %116, %117 : vector<8x256xi1>, vector<8x256xbf16>
    %c16_76 = arith.constant 16 : index
    %c0_77 = arith.constant 0 : index
    %121 = vector.load %arg11[%c16_76, %c0_77] : memref<72x256xbf16, #tpu.memory_space<vmem>>, vector<8x256xbf16>
    tpu.vector_store %arg11[%c16_76, %c0_77], %120 {strides = array<i32>} : memref<72x256xbf16, #tpu.memory_space<vmem>>, vector<8x256xbf16>,
    %c0_78 = arith.constant 0 : index
    %c127_79 = arith.constant 127 : index
    %122 = vector.load %arg10[%c0_78, %c127_79] : memref<8x512xbf16, #tpu.memory_space<vmem>>, vector<8x256xbf16>
    %cst_80 = arith.constant 0.000000e+00 : bf16
    %123 = vector.broadcast %cst_80 : bf16 to vector<8x256xbf16>
    %124 = vector.shape_cast %39 : vector<1x256xi1> to vector<1x256xi1>
    %125 = vector.broadcast %124 : vector<1x256xi1> to vector<8x256xi1>
    %126 = arith.select %125, %122, %123 : vector<8x256xi1>, vector<8x256xbf16>
    %c24_81 = arith.constant 24 : index
    %c0_82 = arith.constant 0 : index
    %127 = vector.load %arg11[%c24_81, %c0_82] : memref<72x256xbf16, #tpu.memory_space<vmem>>, vector<8x256xbf16>
    tpu.vector_store %arg11[%c24_81, %c0_82], %126 {strides = array<i32>} : memref<72x256xbf16, #tpu.memory_space<vmem>>, vector<8x256xbf16>,
    %c0_83 = arith.constant 0 : index
    %c128_84 = arith.constant 128 : index
    %128 = vector.load %arg10[%c0_83, %c128_84] : memref<8x512xbf16, #tpu.memory_space<vmem>>, vector<8x256xbf16>
    %c32_85 = arith.constant 32 : index
    %c0_86 = arith.constant 0 : index
    %129 = vector.load %arg11[%c32_85, %c0_86] : memref<72x256xbf16, #tpu.memory_space<vmem>>, vector<8x256xbf16>
    tpu.vector_store %arg11[%c32_85, %c0_86], %128 {strides = array<i32>} : memref<72x256xbf16, #tpu.memory_space<vmem>>, vector<8x256xbf16>,
    %c0_87 = arith.constant 0 : index
    %c129_88 = arith.constant 129 : index
    %130 = vector.load %arg10[%c0_87, %c129_88] : memref<8x512xbf16, #tpu.memory_space<vmem>>, vector<8x256xbf16>
    %cst_89 = arith.constant 0.000000e+00 : bf16
    %131 = vector.broadcast %cst_89 : bf16 to vector<8x256xbf16>
    %132 = vector.shape_cast %41 : vector<1x256xi1> to vector<1x256xi1>
    %133 = vector.broadcast %132 : vector<1x256xi1> to vector<8x256xi1>
    %134 = arith.select %133, %130, %131 : vector<8x256xi1>, vector<8x256xbf16>
    %c40_90 = arith.constant 40 : index
    %c0_91 = arith.constant 0 : index
    %135 = vector.load %arg11[%c40_90, %c0_91] : memref<72x256xbf16, #tpu.memory_space<vmem>>, vector<8x256xbf16>
    tpu.vector_store %arg11[%c40_90, %c0_91], %134 {strides = array<i32>} : memref<72x256xbf16, #tpu.memory_space<vmem>>, vector<8x256xbf16>,
    %c0_92 = arith.constant 0 : index
    %c143_93 = arith.constant 143 : index
    %136 = vector.load %arg10[%c0_92, %c143_93] : memref<8x512xbf16, #tpu.memory_space<vmem>>, vector<8x256xbf16>
    %cst_94 = arith.constant 0.000000e+00 : bf16
    %137 = vector.broadcast %cst_94 : bf16 to vector<8x256xbf16>
    %138 = vector.shape_cast %39 : vector<1x256xi1> to vector<1x256xi1>
    %139 = vector.broadcast %138 : vector<1x256xi1> to vector<8x256xi1>
    %140 = arith.select %139, %136, %137 : vector<8x256xi1>, vector<8x256xbf16>
    %c48_95 = arith.constant 48 : index
    %c0_96 = arith.constant 0 : index
    %141 = vector.load %arg11[%c48_95, %c0_96] : memref<72x256xbf16, #tpu.memory_space<vmem>>, vector<8x256xbf16>
    tpu.vector_store %arg11[%c48_95, %c0_96], %140 {strides = array<i32>} : memref<72x256xbf16, #tpu.memory_space<vmem>>, vector<8x256xbf16>,
    %c0_97 = arith.constant 0 : index
    %c144_98 = arith.constant 144 : index
    %142 = vector.load %arg10[%c0_97, %c144_98] : memref<8x512xbf16, #tpu.memory_space<vmem>>, vector<8x256xbf16>
    %c56_99 = arith.constant 56 : index
    %c0_100 = arith.constant 0 : index
    %143 = vector.load %arg11[%c56_99, %c0_100] : memref<72x256xbf16, #tpu.memory_space<vmem>>, vector<8x256xbf16>
    tpu.vector_store %arg11[%c56_99, %c0_100], %142 {strides = array<i32>} : memref<72x256xbf16, #tpu.memory_space<vmem>>, vector<8x256xbf16>,
    %c0_101 = arith.constant 0 : index
    %c145_102 = arith.constant 145 : index
    %144 = vector.load %arg10[%c0_101, %c145_102] : memref<8x512xbf16, #tpu.memory_space<vmem>>, vector<8x256xbf16>
    %cst_103 = arith.constant 0.000000e+00 : bf16
    %145 = vector.broadcast %cst_103 : bf16 to vector<8x256xbf16>
    %146 = vector.shape_cast %41 : vector<1x256xi1> to vector<1x256xi1>
    %147 = vector.broadcast %146 : vector<1x256xi1> to vector<8x256xi1>
    %148 = arith.select %147, %144, %145 : vector<8x256xi1>, vector<8x256xbf16>
    %c64_104 = arith.constant 64 : index
    %c0_105 = arith.constant 0 : index
    %149 = vector.load %arg11[%c64_104, %c0_105] : memref<72x256xbf16, #tpu.memory_space<vmem>>, vector<8x256xbf16>
    tpu.vector_store %arg11[%c64_104, %c0_105], %148 {strides = array<i32>} : memref<72x256xbf16, #tpu.memory_space<vmem>>, vector<8x256xbf16>,
    %c0_106 = arith.constant 0 : index
    %c0_107 = arith.constant 0 : index
    %150 = vector.load %arg5[%c0_106, %c0_107] : memref<8x72xbf16, #tpu.memory_space<vmem>>, vector<8x72xbf16>
    %c0_108 = arith.constant 0 : index
    %c0_109 = arith.constant 0 : index
    %151 = vector.load %arg11[%c0_108, %c0_109] : memref<72x256xbf16, #tpu.memory_space<vmem>>, vector<72x256xbf16>
    %cst_110 = arith.constant dense<0.000000e+00> : vector<8x256xf32>
    %152 = tpu.matmul %150, %151, %cst_110 {dimension_numbers = #tpu.dot_dimension_numbers<[1], [0], [0], [1], [0, 0, 1, 1], [], []>} : vector<8x72xbf16>, vector<72x256xbf16>, vector<8x256xf32> -> vector<8x256xf32>
    %c0_111 = arith.constant 0 : index
    %c0_112 = arith.constant 0 : index
    %153 = vector.load %arg6[%c0_111, %c0_112] : memref<8x1xf32, #tpu.memory_space<vmem>>, vector<8x1xf32>
    %154 = vector.broadcast %153 : vector<8x1xf32> to vector<8x256xf32>
    %155 = arith.addf %152, %154 : vector<8x256xf32>
    %cst_113 = arith.constant 0.000000e+00 : f32
    %156 = vector.broadcast %cst_113 : f32 to vector<8x256xf32>
    %157 = arith.maximumf %155, %156 : vector<8x256xf32>
    %158 = arith.truncf %157 : vector<8x256xf32> to vector<8x256xbf16>
    %c0_114 = arith.constant 0 : index
    %c0_115 = arith.constant 0 : index
    %c0_116 = arith.constant 0 : index
    %159 = vector.load %arg7[%c0_114, %c0_115, %c0_116] : memref<1x8x256xbf16, #tpu.memory_space<vmem>>, vector<1x8x256xbf16>
    %160 = vector.shape_cast %159 : vector<1x8x256xbf16> to vector<8x256xbf16>
    %161 = vector.shape_cast %158 : vector<8x256xbf16> to vector<1x8x256xbf16>
    tpu.vector_store %arg7[%c0_114, %c0_115, %c0_116], %161 {strides = array<i32>} : memref<1x8x256xbf16, #tpu.memory_space<vmem>>, vector<1x8x256xbf16>,
    return
  }
  func.func @transform_0(%arg0: i32, %arg1: i32) -> (i32, i32, i32, i32) {
    %c0_i32 = arith.constant 0 : i32
    %c0_i32_0 = arith.constant 0 : i32
    %c0_i32_1 = arith.constant 0 : i32
    return %arg0, %arg1, %c0_i32, %c0_i32_0 : i32, i32, i32, i32
  }
  func.func @transform_1(%arg0: i32, %arg1: i32) -> (i32, i32) {
    %c0_i32 = arith.constant 0 : i32
    %c0_i32_0 = arith.constant 0 : i32
    %c0_i32_1 = arith.constant 0 : i32
    return %c0_i32, %c0_i32_0 : i32, i32
  }
  func.func @transform_2(%arg0: i32, %arg1: i32) -> (i32, i32) {
    %c0_i32 = arith.constant 0 : i32
    %c0_i32_0 = arith.constant 0 : i32
    %c0_i32_1 = arith.constant 0 : i32
    return %c0_i32, %c0_i32_0 : i32, i32
  }
  func.func @transform_3(%arg0: i32, %arg1: i32) -> (i32, i32) {
    %c0_i32 = arith.constant 0 : i32
    %c0_i32_0 = arith.constant 0 : i32
    %c0_i32_1 = arith.constant 0 : i32
    return %c0_i32, %c0_i32_0 : i32, i32
  }
  func.func @transform_4(%arg0: i32, %arg1: i32) -> (i32, i32) {
    %c0_i32 = arith.constant 0 : i32
    %c0_i32_0 = arith.constant 0 : i32
    %c0_i32_1 = arith.constant 0 : i32
    return %c0_i32, %c0_i32_0 : i32, i32
  }
  func.func @transform_5(%arg0: i32, %arg1: i32) -> (i32, i32, i32) {
    %c0_i32 = arith.constant 0 : i32
    %c0_i32_0 = arith.constant 0 : i32
    return %arg0, %c0_i32, %arg1 : i32, i32, i32
  }
}

</mosaic_0001>

<bundles_post_ra>
// kernel: double_conv.1
= control target key start
LH: loop header
LB: loop body
LE: loop exit
PB: predicated region body
PF: predicated region fallthrough
CT: control target
= control target key end

     0   :  { %s1101_s18 = smov 0   ;;  %s1103_s19 = smov 0   ;;  %s1342_s0 = inlined_call_operand.vmem [shape: f32[2,1,4,256], index: 0, kind: input, shape index: {}]   ;;  %s1343_s1 = inlined_call_operand.vmem [shape: bf16[8,72], index: 1, kind: input, shape index: {}]   ;;  %s1344_s2 = inlined_call_operand.vmem [shape: f32[8,1], index: 2, kind: input, shape index: {}]   ;;  %s1345_s3 = inlined_call_operand.vmem [shape: bf16[8,72], index: 3, kind: input, shape index: {}]   ;;  %s1346_s4 = inlined_call_operand.vmem [shape: f32[8,1], index: 4, kind: input, shape index: {}]   ;;  %s1347_s5 = inlined_call_operand.vmem [shape: bf16[2,8,256], index: 5, kind: output, shape index: {}]  }
   0x1   :  { %s1105_s20 = smov 0  }
   0x2 LB: > { %s27_s21 = sadd.s32 1, %s1056_s19  ;;  %p964_p0 = scmp.ge.s32.totalorder %s1060_s20, 1  ;;  %s1060_s20 = sphi %s1105_s20, %s15_s20   ;;  %s1056_s19 = sphi %s1103_s19, %s1373_s19   ;;  %s1052_s18 = sphi %s1101_s18, %s1372_s18  }
   0x3   : > { %p29_p1 = scmp.ge.s32.totalorder %s27_s21, 2  ;;  %p207_p2 = scmp.lt.s32.totalorder %s1060_s20, 3 }
   0x5   : > { %s1375_s21 = smov (%p29_p1, %s27_s21), 0  ;;  %p208_p3 = pnand %p964_p0, %p207_p2 }
   0x6   : > { %v265_v0 = vlaneseq (!%p208_p3)  ;;  %v1062_v1 = vmov (!%p208_p3), 0   ;;  %p243_p4 = scmp.lt.s32.totalorder (!%p208_p3), %s1052_s18, 1  ;;  %s1063_s26 = smov (!%p208_p3), 111   ;;  %vm324_vm6 = vcmask (!%p208_p3), 908288   ;;  %vm394_vm8 = vcmask (!%p208_p3), 1039360   ;;  %v506_v58 = vld [vmem:[%s1344_s2] sm:$0xff] (!%p208_p3) }
   0x7   : > { %211 = sbr.rel (%p208_p3) target bundleno = 882 (0x372), region = 40  ;;  %296 = vst [vmem:[#allocation2] sm:$0xcc] (!%p208_p3), %v1062_v1  ;;  %297 = vst [vmem:[#allocation2 + $0x8] sm:$0xcc] (!%p208_p3), %v1062_v1  ;;  %600 = vmatprep.mubr.bf16.mxu0 (!%p208_p3), %v1062_v1  ;;  %1036 = vset.pattern.permute.xlu0 (!%p208_p3), %v1062_v1  ;;  %s1064_s27 = smov (!%p208_p3), 127  }
   0x8   : > { %298 = vst [vmem:[#allocation2] sm:$0x3] (!%p208_p3), %v1062_v1  ;;  %299 = vst [vmem:[#allocation2 + $0xc] sm:$0x3] (!%p208_p3), %v1062_v1  ;;  %v266_v2 = vand.u32 (!%p208_p3), 127, %v265_v0  ;;  %850 = vmatprep.mubr.bf16.mxu1 (!%p208_p3), %v1062_v1  ;;  %s1065_s28 = smov (!%p208_p3), 113  }
   0x9   : > { %611 = vst [vmem:[#allocation4] sm:$0xf] (!%p208_p3), %v1062_v1  ;;  %612 = vst [vmem:[#allocation4 + $0xc] sm:$0xf] (!%p208_p3), %v1062_v1  ;;  %s1066_s29 = smov (!%p208_p3), 1   ;;  %s1067_s30 = smov (!%p208_p3), 15  }
   0xa   : > { %v267_v3 = vadd.s32 (!%p208_p3), 128, %v266_v2  ;;  %v272_v4 = vand.u32 (!%p208_p3), 15, %v266_v2  ;;  %s1068_s6 = smov (!%p208_p3), 17   ;;  %s1069_s7 = smov (!%p208_p3), 112   ;;  %vm370_vm10 = vcmask (!%p208_p3), 924672   ;;  %vm409_vm14 = vcmask (!%p208_p3), 7168  }
   0xb   : > { %s1070_s8 = smov (!%p208_p3), 16  }
   0xc   : > { %v279_v5 = vand.u32 (!%p208_p3), 15, %v267_v3  ;;  %vm292_vm0 = vcmp.ge.s32.totalorder (!%p208_p3), %v272_v4, 1  ;;  %vm294_vm1 = vcmp.le.s32.totalorder (!%p208_p3), %v272_v4, 14 }
   0xe   : > { %s1377_s18 = smov (!%p243_p4, %s1052_s18), 1  ;;  %vm293_vm2 = vcmp.ge.s32.totalorder %v279_v5, 1  ;;  %vm295_vm3 = vcmp.le.s32.totalorder %v279_v5, 14 }
   0xf   : > { %s998_s22 = sshll.u32 %s1377_s18, 3  ;;  %vm319_vm4 = vmpackc.low %vm293_vm2, %vm292_vm0  ;;  %v460_v11 = vld [vmem:[#allocation2 + $0xc] sm:$0xf] }
  0x10   : > { %s251_s25 = scalar_lea.vmem %s1342_s0, %s998_s22  ;;  %v320_v7 = vsel %vm319_vm4, 65537, %v1062_v1  ;;  %vm365_vm5 = vmpackc.low %vm295_vm3, %vm294_vm1  ;;  %v416_v40 = vld [vmem:[#allocation2 + $0xc] sm:$0xf]  ;;  %vm385_vm1 = vcmask 121856   ;;  %vm340_vm4 = vcmask 138240   ;;  %s260_s24 = scalar_lea.vmem %s1347_s5, %s998_s22 }
  0x11   : > { %v300_v6 = vld [vmem:[%s251_s25] sm:$0xff]  ;;  %321 = vrot.lane.b32.xlu0 %v320_v7, %s1063_s26  ;;  %391 = vrot.lane.b32.xlu1 %v320_v7, %s1064_s27  ;;  %v366_v9 = vsel %vm365_vm5, 65537, %v1062_v1  ;;  %v438_v47 = vld [vmem:[#allocation2 + $0xc] sm:$0xf]  ;;  %v687_v57 = vld [vmem:[#allocation4 + $0xc] sm:$0xf] }
  0x12   : > { %v302_v8 = vcombine.high %v300_v6, %v300_v6  ;;  %v475_v52 = vld [vmem:[#allocation2 + $0xc] sm:$0xf] }
  0x14   : > { %v1000_v10 = vpack.c.bf16 %v302_v8, %v300_v6 }
  0x15   : > { %367 = vrot.lane.b32.xlu0 %v366_v9, %s1065_s28  ;;  %417 = vrot.lane.b32.xlu1 %v366_v9, %s1066_s29 }
  0x16   : > { %312 = vst [vmem:[#allocation2 + $0x4] sm:$0x33] %v1000_v10 }
  0x19   : > { %439 = vrot.lane.b32.xlu0 %v320_v7, %s1067_s30  ;;  %476 = vrot.lane.b32.xlu1 %v366_v9, %s1068_s6 }
  0x1d   : > { %v344_v12 = vld [vmem:[#allocation2] sm:$0xff]  ;;  %465 = vrot.lane.b32.xlu1 %v460_v11, %s1069_s7  ;;  %v345_v13 = vld [vmem:[#allocation2 + $0x8] sm:$0xf] }
  0x1e   : > { %348 = vrot.lane.b32.xlu0 %v344_v12, %s1070_s8  ;;  %v1135_v14 = vld [vmem:[#allocation2 + $0x4] sm:$0xff] }
  0x1f   : > { %v314_v18 = vld [vmem:[#allocation2 + $0x8] sm:$0xf] }
  0x20   : > { %v360_v27 = vld [vmem:[#allocation2 + $0x8] sm:$0xf] }
  0x21   : > { %350 = vrot.lane.b32.xlu1 %v345_v13, %s1070_s8  ;;  %v390_v32 = vld [vmem:[#allocation2 + $0x8] sm:$0xf] }
  0x22   : > { %463 = vrot.lane.b32.xlu0 %v1135_v14, %s1069_s7 }
  0x83   : > { %v322_v15 = vpop.permute.xlu0 %321  ;;  %v392_v16 = vpop.permute.xlu1 %391 }
  0x84   : > { %v323_v17 = vrot.slane %v322_v15, 4  ;;  %v393_v19 = vrot.slane %v392_v16, 4 }
  0x86   : > { %v1141_v20 = vsel %vm324_vm6, %v323_v17, %v322_v15  ;;  %vm1143_vm7 = vcmp.ne.s16.totalorder %v323_v17, 0  ;;  %v1154_v28 = vsel %vm394_vm8, %v393_v19, %v392_v16  ;;  %vm1164_vm12 = vcmp.ne.s16.totalorder %v393_v19, 0 }
  0x87   : > { %vm326_vm9 = vcmp.ne.s16.totalorder %v1141_v20, 0  ;;  %v368_v22 = vpop.permute.xlu0 %367  ;;  %v329_v23 = vsel %vm1143_vm7, %v314_v18, 0  ;;  %v418_v24 = vpop.permute.xlu1 %417  ;;  %vm1348_vm15 = vcmp.ne.s16.totalorder %v1154_v28, 0  ;;  %v399_v37 = vsel %vm1164_vm12, %v390_v32, 0 }
  0x88   : > { %v369_v25 = vrot.slane %v368_v22, 4  ;;  %334 = vrot.lane.b32.xlu1 %v329_v23, %s1068_s6  ;;  %v328_v26 = vsel %vm326_vm9, %v344_v12, 0  ;;  %v419_v31 = vrot.slane %v418_v24, 4  ;;  %v398_v43 = vsel %vm1348_vm15, %v344_v12, 0 }
  0x89   : > { %332 = vrot.lane.b32.xlu0 %v328_v26, %s1068_s6 }
  0x8a   : > { %v1158_v29 = vsel %vm370_vm10, %v369_v25, %v368_v22  ;;  %vm1160_vm11 = vcmp.ne.s16.totalorder %v369_v25, 0  ;;  %v1179_v38 = vsel %vm409_vm14, %v419_v31, %v418_v24  ;;  %vm1181_vm0 = vcmp.ne.s16.totalorder %v419_v31, 0 }
  0x8b   : > { %vm372_vm13 = vcmp.ne.s16.totalorder %v1158_v29, 0  ;;  %v375_v34 = vsel %vm1160_vm11, %v360_v27, 0  ;;  %v440_v35 = vpop.permute.xlu0 %439  ;;  %v477_v42 = vpop.permute.xlu1 %476  ;;  %vm1349_vm2 = vcmp.ne.s16.totalorder %v1179_v38, 0  ;;  %v424_v44 = vsel %vm1181_vm0, %v416_v40, 0 }
  0x8c   : > { %380 = vrot.lane.b32.xlu1 %v375_v34, %s1067_s30  ;;  %v374_v36 = vsel %vm372_vm13, %v344_v12, 0  ;;  %v441_v39 = vrot.slane %v440_v35, 4  ;;  %v478_v46 = vrot.slane %v477_v42, 4  ;;  %v423_v49 = vsel %vm1349_vm2, %v1135_v14, 0 }
  0x8d   : > { %378 = vrot.lane.b32.xlu0 %v374_v36, %s1067_s30  ;;  %v689_v59 = vsel %vm1181_vm0, %v687_v57, 0  ;;  %vm1352_vm0 = vcmask 916480  }
  0x8e   : > { %v1193_v45 = vsel %vm385_vm1, %v441_v39, %v440_v35  ;;  %vm1195_vm3 = vcmp.ne.s16.totalorder %v441_v39, 0  ;;  %v1208_v51 = vsel %vm340_vm4, %v478_v46, %v477_v42  ;;  %vm1210_vm15 = vcmp.ne.s16.totalorder %v478_v46, 0 }
  0x8f   : > { %vm1351_vm5 = vcmp.ne.s16.totalorder %v1193_v45, 0  ;;  %v446_v50 = vsel %vm1195_vm3, %v438_v47, 0  ;;  %vm1350_vm2 = vcmp.ne.s16.totalorder %v1208_v51, 0  ;;  %v483_v55 = vsel %vm1210_vm15, %v475_v52, 0  ;;  %v466_v60 = vpop.permute.xlu1 %465 }
  0x90   : > { %404 = vrot.lane.b32.xlu1 %v399_v37, %s1066_s29  ;;  %v445_v54 = vsel %vm1351_vm5, %v1135_v14, 0  ;;  %v482_v56 = vsel %vm1350_vm2, %v1135_v14, 0  ;;  %v349_v61 = vpop.permute.xlu0 %348  ;;  %vm338_vm2 = vcmask 1043456   ;;  %vm355_vm5 = vcmask 130048  }
  0x91   : > { %402 = vrot.lane.b32.xlu0 %v398_v43, %s1066_s29  ;;  %v352_v0 = vrot.slane %v349_v61, 4  ;;  %v468_v26 = vrot.slane %v466_v60, 4 }
  0x93   : > { %v351_v62 = vpop.permute.xlu1 %350 }
  0x94   : > { %429 = vrot.lane.b32.xlu1 %v424_v44, %s1064_s27  ;;  %v464_v63 = vpop.permute.xlu0 %463  ;;  %v353_v1 = vrot.slane %v351_v62, 4 }
  0x95   : > { %427 = vrot.lane.b32.xlu0 %v423_v49, %s1064_s27  ;;  %v467_v35 = vrot.slane %v464_v63, 4 }
  0x96   : > { %v354_v6 = vsel %vm338_vm2, %v352_v0, %v353_v1 }
  0x97   : > { %v356_v11 = vsel %vm355_vm5, %v349_v61, %v354_v6  ;;  %v469_v46 = vsel %vm338_vm2, %v467_v35, %v468_v26  ;;  %v733_v26 = vld [vmem:[#allocation4 + $0xc] sm:$0xf] }
  0x98   : > { %451 = vrot.lane.b32.xlu1 %v446_v50, %s1065_s28  ;;  %v735_v48 = vsel %vm1210_vm15, %v733_v26, 0 }
  0x99   : > { %449 = vrot.lane.b32.xlu0 %v445_v54, %s1065_s28 }
  0x9c   : > { %488 = vrot.lane.b32.xlu1 %v483_v55, %s1063_s26  ;;  %v471_v55 = vsel %vm1352_vm0, %v464_v63, %v469_v46  ;;  %vm1353_vm0 = vcmask 588800  }
  0x9d   : > { %486 = vrot.lane.b32.xlu0 %v482_v56, %s1063_s26 }
  0xa0   : > { %694 = vrot.lane.b32.xlu1 %v689_v59, %s1064_s27 }
  0xa1   : > { %509 = vperm.xlu0 %1036, %v506_v58  }
  0xfa   : > { %v335_v2 = vpop.permute.xlu1 %334 }
  0xfb   : > { %v337_v3 = vrot.slane %v335_v2, 4  ;;  %v333_v4 = vpop.permute.xlu0 %332  ;;  %v496_v2 = vld [vmem:[%s1343_s1] sm:$0xf] }
  0xfc   : > { %v336_v5 = vrot.slane %v333_v4, 4 }
  0xfe   : > { %v381_v7 = vpop.permute.xlu1 %380  ;;  %v339_v8 = vsel %vm338_vm2, %v336_v5, %v337_v3 }
  0xff   : > { %v379_v9 = vpop.permute.xlu0 %378  ;;  %v341_v10 = vsel %vm340_vm4, %v333_v4, %v339_v8  ;;  %v383_v12 = vrot.slane %v381_v7, 4 }
 0x100   : > { %v382_v13 = vrot.slane %v379_v9, 4  ;;  %v971_v15 = vcombine.high %v341_v10, %v356_v11  ;;  %v970_v16 = vcombine.low %v341_v10, %v356_v11 }
 0x102   : > { %v405_v17 = vpop.permute.xlu1 %404  ;;  %568 = vmatprep.subr.bf16.mxu0 %v971_v15  ;;  %v384_v22 = vsel %vm338_vm2, %v382_v13, %v383_v12 }
 0x103   : > { %v407_v18 = vrot.slane %v405_v17, 4  ;;  %569 = vmatpush1.bf16.msra.mxu0 %v970_v16  ;;  %v403_v19 = vpop.permute.xlu0 %402  ;;  %v386_v27 = vsel %vm385_vm1, %v379_v9, %v384_v22 }
 0x104   : > { %v406_v23 = vrot.slane %v403_v19, 4 }
 0x106   : > { %v408_v24 = vsel %vm338_vm2, %v406_v23, %v407_v18  ;;  %v430_v25 = vpop.permute.xlu1 %429 }
 0x107   : > { %v410_v31 = vsel %vm409_vm14, %v403_v19, %v408_v24  ;;  %v432_v32 = vrot.slane %v430_v25, 4  ;;  %v428_v34 = vpop.permute.xlu0 %427  ;;  %v703_v24 = vld [vmem:[#allocation4 + $0xc] sm:$0xf] }
 0x108   : > { %v972_v36 = vcombine.low %v386_v27, %v410_v31  ;;  %v973_v37 = vcombine.high %v386_v27, %v410_v31  ;;  %v431_v39 = vrot.slane %v428_v34, 4  ;;  %v705_v25 = vsel %vm1195_vm3, %v703_v24, 0 }
 0x10a   : > { %v433_v40 = vsel %vm338_vm2, %v431_v39, %v432_v32  ;;  %v452_v41 = vpop.permute.xlu1 %451  ;;  %570 = vmatprep.subr.bf16.mxu0 %v973_v37 }
 0x10b   : > { %v434_v42 = vsel %vm394_vm8, %v428_v34, %v433_v40  ;;  %v454_v43 = vrot.slane %v452_v41, 4  ;;  %571 = vmatpush1.bf16.msra.mxu0 %v972_v36  ;;  %v450_v44 = vpop.permute.xlu0 %449 }
 0x10c   : > { %v974_v47 = vcombine.low %v1135_v14, %v434_v42  ;;  %v975_v49 = vcombine.high %v1135_v14, %v434_v42  ;;  %v453_v50 = vrot.slane %v450_v44, 4 }
 0x10e   : > { %v455_v52 = vsel %vm338_vm2, %v453_v50, %v454_v43  ;;  %v489_v54 = vpop.permute.xlu1 %488  ;;  %572 = vmatprep.subr.bf16.mxu0 %v975_v49 }
 0x10f   : > { %v456_v56 = vsel %vm370_vm10, %v450_v44, %v455_v52  ;;  %v491_v57 = vrot.slane %v489_v54, 4  ;;  %573 = vmatpush1.bf16.msra.mxu0 %v974_v47  ;;  %v487_v58 = vpop.permute.xlu0 %486 }
 0x110   : > { %v976_v59 = vcombine.low %v456_v56, %v471_v55  ;;  %v977_v60 = vcombine.high %v456_v56, %v471_v55  ;;  %v490_v61 = vrot.slane %v487_v58, 4 }
 0x112   : > { %v492_v62 = vsel %vm338_vm2, %v490_v61, %v491_v57  ;;  %574 = vmatprep.subr.bf16.mxu0 %v977_v60  ;;  %v695_v27 = vpop.permute.xlu1 %694 }
 0x113   : > { %v493_v14 = vsel %vm324_vm6, %v487_v58, %v492_v62  ;;  %575 = vmatpush1.bf16.msra.mxu0 %v976_v59  ;;  %v697_v57 = vrot.slane %v695_v27, 4 }
 0x114   : > { %v978_v0 = vcombine.low %v493_v14, %v493_v14  ;;  %v979_v1 = vcombine.high %v493_v14, %v493_v14 }
 0x116   : > { %980 = vmatprep.subr.msk.bf16.mxu0 %vm338_vm2, %v979_v1  ;;  %v563_v63 = vsel %vm338_vm2, %v978_v0, 0 }
 0x117   : > { %577 = vmatpush1.bf16.msra.mxu0 %v563_v63 }
 0x11a   : > { %981 = vmatmul.mubr.msk.bf16.vlgmr.msra.gmra.mrb[0].mxu0 %vm1353_vm0, %v496_v2  ;;  %vm1366_vm0 = vcmp.ne.s16.totalorder %v1154_v28, 0 }
 0x120   : > { %v510_v3 = vpop.permute.xlu0 %509 }
 0x1ed   : > { %v602_v4 = vpop.f32.mrb[0].mxu0 }
 0x1ee   : > { %v603_v5 = vadd.f32 %v602_v4, %v510_v3  ;;  %v604_v6 = vpop.f32.mrb[1].mxu0 }
 0x1ef   : > { %v605_v7 = vadd.f32 %v604_v6, %v510_v3  ;;  %v606_v8 = vpop.f32.mrb[2].mxu0 }
 0x1f0   : > { %v609_v9 = vmax.f32 %v603_v5, 0.0  ;;  %v607_v10 = vpop.f32.mrb[3].mxu0 }
 0x1f1   : > { %v610_v11 = vmax.f32 %v605_v7, 0.0 }
 0x1f3   : > { %v1257_v12 = vpack.c.bf16 %v610_v11, %v609_v9 }
 0x1f5   : > { %621 = vst [vmem:[#allocation4 + $0x4] sm:$0xff] %v1257_v12 }
 0x1fc   : > { %v639_v13 = vld [vmem:[#allocation4 + $0x8] sm:$0xf]  ;;  %v638_v15 = vld [vmem:[#allocation4] sm:$0xff] }
 0x1fd   : > { %644 = vrot.lane.b32.xlu1 %v639_v13, %s1070_s8  ;;  %642 = vrot.lane.b32.xlu0 %v638_v15, %s1070_s8  ;;  %v654_v16 = vsel %vm372_vm13, %v638_v15, 0  ;;  %v624_v17 = vsel %vm326_vm9, %v638_v15, 0  ;;  %v623_v18 = vld [vmem:[#allocation4 + $0x8] sm:$0xf]  ;;  %v670_v19 = vsel %vm1366_vm0, %v638_v15, 0  ;;  %vm1367_vm9 = vcmp.ne.s16.totalorder %v1179_v38, 0 }
 0x1fe   : > { %v625_v22 = vsel %vm1143_vm7, %v623_v18, 0  ;;  %v653_v29 = vld [vmem:[#allocation4 + $0x8] sm:$0xf]  ;;  %v688_v28 = vsel %vm1367_vm9, %v1257_v12, 0  ;;  %vm1368_vm7 = vcmp.ne.s16.totalorder %v1193_v45, 0  ;;  %v758_v45 = vld [vmem:[%s1346_s4] sm:$0xff] }
 0x1ff   : > { %v655_v20 = vsel %vm1160_vm11, %v653_v29, 0  ;;  %v669_v23 = vld [vmem:[#allocation4 + $0x8] sm:$0xf]  ;;  %v704_v30 = vsel %vm1368_vm7, %v1257_v12, 0  ;;  %v719_v38 = vld [vmem:[#allocation4 + $0xc] sm:$0xf] }
 0x200   : > { %v671_v21 = vsel %vm1164_vm12, %v669_v23, 0  ;;  %vm1369_vm11 = vcmp.ne.s16.totalorder %v1208_v51, 0 }
 0x201   : > { %658 = vrot.lane.b32.xlu0 %v654_v16, %s1067_s30  ;;  %628 = vrot.lane.b32.xlu1 %v624_v17, %s1068_s6  ;;  %v734_v33 = vsel %vm1369_vm11, %v1257_v12, 0 }
 0x205   : > { %674 = vrot.lane.b32.xlu0 %v670_v19, %s1066_s29  ;;  %630 = vrot.lane.b32.xlu1 %v625_v22, %s1068_s6 }
 0x209   : > { %722 = vrot.lane.b32.xlu0 %v1257_v12, %s1069_s7  ;;  %660 = vrot.lane.b32.xlu1 %v655_v20, %s1067_s30 }
 0x20d   : > { %692 = vrot.lane.b32.xlu0 %v688_v28, %s1064_s27  ;;  %676 = vrot.lane.b32.xlu1 %v671_v21, %s1066_s29 }
 0x211   : > { %708 = vrot.lane.b32.xlu0 %v704_v30, %s1065_s28  ;;  %710 = vrot.lane.b32.xlu1 %v705_v25, %s1065_s28 }
 0x215   : > { %738 = vrot.lane.b32.xlu0 %v734_v33, %s1063_s26  ;;  %724 = vrot.lane.b32.xlu1 %v719_v38, %s1069_s7  ;;  %v748_v38 = vld [vmem:[%s1345_s3] sm:$0xf] }
 0x219   : > { %761 = vperm.xlu0 %1036, %v758_v45   ;;  %740 = vrot.lane.b32.xlu1 %v735_v48, %s1063_s26 }
 0x26f   : > { %v645_v31 = vpop.permute.xlu1 %644  ;;  %v643_v32 = vpop.permute.xlu0 %642 }
 0x270   : > { %v647_v35 = vrot.slane %v645_v31, 4  ;;  %v646_v36 = vrot.slane %v643_v32, 4 }
 0x272   : > { %v648_v42 = vsel %vm338_vm2, %v646_v36, %v647_v35 }
 0x273   : > { %v659_v51 = vpop.permute.xlu0 %658  ;;  %v629_v34 = vpop.permute.xlu1 %628  ;;  %v649_v47 = vsel %vm355_vm5, %v643_v32, %v648_v42 }
 0x274   : > { %v632_v40 = vrot.slane %v629_v34, 4  ;;  %v662_v54 = vrot.slane %v659_v51, 4 }
 0x277   : > { %v675_v37 = vpop.permute.xlu0 %674  ;;  %v631_v39 = vpop.permute.xlu1 %630 }
 0x278   : > { %v633_v41 = vrot.slane %v631_v39, 4  ;;  %v678_v58 = vrot.slane %v675_v37, 4 }
 0x27a   : > { %v634_v43 = vsel %vm338_vm2, %v632_v40, %v633_v41 }
 0x27b   : > { %v723_v53 = vpop.permute.xlu0 %722  ;;  %v661_v44 = vpop.permute.xlu1 %660  ;;  %v635_v46 = vsel %vm340_vm4, %v629_v34, %v634_v43 }
 0x27c   : > { %v984_v49 = vcombine.high %v635_v46, %v649_v47  ;;  %v983_v50 = vcombine.low %v635_v46, %v649_v47  ;;  %v663_v52 = vrot.slane %v661_v44, 4  ;;  %v726_v10 = vrot.slane %v723_v53, 4 }
 0x27e   : > { %818 = vmatprep.subr.bf16.mxu1 %v984_v49  ;;  %v664_v61 = vsel %vm338_vm2, %v662_v54, %v663_v52 }
 0x27f   : > { %v693_v55 = vpop.permute.xlu0 %692  ;;  %819 = vmatpush1.bf16.msra.mxu1 %v983_v50  ;;  %v677_v56 = vpop.permute.xlu1 %676  ;;  %v665_v5 = vsel %vm385_vm1, %v659_v51, %v664_v61 }
 0x280   : > { %v696_v59 = vrot.slane %v693_v55, 4  ;;  %v679_v60 = vrot.slane %v677_v56, 4 }
 0x282   : > { %v698_v62 = vsel %vm338_vm2, %v696_v59, %v697_v57  ;;  %v680_v14 = vsel %vm338_vm2, %v678_v58, %v679_v60 }
 0x283   : > { %v709_v0 = vpop.permute.xlu0 %708  ;;  %v711_v1 = vpop.permute.xlu1 %710  ;;  %v681_v63 = vsel %vm409_vm14, %v675_v37, %v680_v14  ;;  %v699_v2 = vsel %vm394_vm8, %v693_v55, %v698_v62  ;;  %vm1370_vm8 = vcmask 916480  }
 0x284   : > { %v712_v3 = vrot.slane %v709_v0, 4  ;;  %v713_v4 = vrot.slane %v711_v1, 4  ;;  %v986_v6 = vcombine.high %v665_v5, %v681_v63  ;;  %v985_v7 = vcombine.low %v665_v5, %v681_v63 }
 0x285   : > { %v988_v8 = vcombine.high %v1257_v12, %v699_v2  ;;  %v987_v16 = vcombine.low %v1257_v12, %v699_v2 }
 0x286   : > { %820 = vmatprep.subr.bf16.mxu1 %v986_v6  ;;  %v714_v11 = vsel %vm338_vm2, %v712_v3, %v713_v4 }
 0x287   : > { %v725_v9 = vpop.permute.xlu1 %724  ;;  %821 = vmatpush1.bf16.msra.mxu1 %v985_v7  ;;  %v739_v15 = vpop.permute.xlu0 %738  ;;  %v715_v19 = vsel %vm370_vm10, %v709_v0, %v714_v11  ;;  %vm1371_vm10 = vcmask 588800  }
 0x288   : > { %v727_v13 = vrot.slane %v725_v9, 4  ;;  %822 = vmatprep.subr.bf16.mxu1 %v988_v8  ;;  %v742_v29 = vrot.slane %v739_v15, 4 }
 0x28a   : > { %v728_v17 = vsel %vm338_vm2, %v726_v10, %v727_v13 }
 0x28b   : > { %v741_v18 = vpop.permute.xlu1 %740  ;;  %v729_v22 = vsel %vm1370_vm8, %v723_v53, %v728_v17  ;;  %823 = vmatpush1.bf16.msra.mxu1 %v987_v16 }
 0x28c   : > { %v743_v20 = vrot.slane %v741_v18, 4  ;;  %v990_v23 = vcombine.high %v715_v19, %v729_v22  ;;  %v989_v28 = vcombine.low %v715_v19, %v729_v22 }
 0x28e   : > { %v744_v21 = vsel %vm338_vm2, %v742_v29, %v743_v20  ;;  %824 = vmatprep.subr.bf16.mxu1 %v990_v23 }
 0x28f   : > { %v745_v24 = vsel %vm324_vm6, %v739_v15, %v744_v21  ;;  %825 = vmatpush1.bf16.msra.mxu1 %v989_v28 }
 0x290   : > { %v992_v30 = vcombine.high %v745_v24, %v745_v24  ;;  %v991_v12 = vcombine.low %v745_v24, %v745_v24 }
 0x292   : > { %993 = vmatprep.subr.msk.bf16.mxu1 %vm338_vm2, %v992_v30  ;;  %v813_v25 = vsel %vm338_vm2, %v991_v12, 0 }
 0x293   : > { %827 = vmatpush1.bf16.msra.mxu1 %v813_v25 }
 0x296   : > { %994 = vmatmul.mubr.msk.bf16.vlgmr.msra.gmra.mrb[0].mxu1 %vm1371_vm10, %v748_v38 }
 0x298   : > { %v762_v33 = vpop.permute.xlu0 %761 }
 0x369   : > { %v852_v26 = vpop.f32.mrb[0].mxu1 }
 0x36a   : > { %v853_v45 = vadd.f32 %v852_v26, %v762_v33  ;;  %v854_v48 = vpop.f32.mrb[1].mxu1 }
 0x36b   : > { %v855_v27 = vadd.f32 %v854_v48, %v762_v33  ;;  %v856_v31 = vpop.f32.mrb[2].mxu1 }
 0x36c   : > { %v859_v32 = vmax.f32 %v853_v45, 0.0  ;;  %v857_v51 = vpop.f32.mrb[3].mxu1 }
 0x36d   : > { %v860_v34 = vmax.f32 %v855_v27, 0.0 }
 0x36f   : > { %v1002_v35 = vpack.c.bf16 %v860_v34, %v859_v32 }
 0x371   : > { %869 = vst [vmem:[%s260_s24] sm:$0xff] %v1002_v35 }
 0x372 PF: > { %s15_s20 = sadd.s32 1, %s1060_s20   ;;  %s1372_s18 = smov %s1056_s19 }
 0x373   : > { %p12_p5 = scmp.ge.s32.totalorder %s15_s20, 4   ;;  %s1373_s19 = smov %s1375_s21 }
 0x375   :  { %14 = sbr.rel (!%p12_p5) target bundleno = 2 (0x2), region = 70 }

</bundles_post_ra>
